<compile_context>
chip_gen: v5e
topology: v5e:2x2
jax: 0.10.0
libtpu: 0.0.40
codegen_flags: <defaults>
</compile_context>

<pallas_src>
import functools
import math

import jax
import jax.numpy as jnp
from jax.experimental import pallas as pl
from jax.experimental.pallas import tpu as pltpu

_LANES = 128
_SUBLANES = 8
_ROW_ALIGN = 32                        # covers f32/bf16/int8 sublane packing
_TARGET_BLOCK_BYTES = 2 * 1024 * 1024  # ~2 MiB per block buffer


def _round_up(n, m):
    return ((n + m - 1) // m) * m


def _binarize_block_kernel(x_ref, bin_ref, part_ref, *, total_rows):
    """Binarize one (block_rows, 128) tile; emit an (8, 128) partial |x| sum.

    total_rows is None when every block is fully in-bounds; otherwise it is the
    number of valid rows in the whole slab (masks the ragged last block).
    """
    x = x_ref[...]

    # sign(x) with sign(0) -> +1, computed in the native dtype (no f32 pass).
    # TODO(synk): NaN inputs map to -1 here; torch.sign would propagate NaN.
    one = jnp.ones((), dtype=x_ref.dtype)
    bin_ref[...] = jnp.where(x >= 0, one, -one)

    absx = jnp.abs(x).astype(jnp.float32)
    block_rows = x_ref.shape[0]
    if total_rows is not None:
        # Last block may extend past the slab: OOB reads are unspecified, so
        # drop them from the |x| sum (OOB stores are dropped by Pallas/TPU).
        row_ids = (pl.program_id(0) * block_rows
                   + jax.lax.broadcasted_iota(jnp.int32, absx.shape, 0))
        absx = jnp.where(row_ids < total_rows, absx, 0.0)

    # Reduce only along (8,128)-tile boundaries: (block_rows,128) ->
    # (block_rows//8, 8, 128) summed over axis 0.  Pure VPU vreg adds: no
    # cross-lane XLU reduce, no vreg->SMEM scalar extraction, no 4-byte DMA.
    # The tiny (8,128) per-block partial is reduced in the wrapper.
    part_ref[...] = jnp.sum(
        jnp.reshape(absx, (block_rows // _SUBLANES, _SUBLANES, _LANES)), axis=0
    )


@jax.jit
def binarize_with_scale_factor(x):
    """JAX/Pallas equivalent of BinarizeWithScaleFactor.forward.

    Returns (binarized, scale_factor) with
      binarized    = +1 where x >= 0 else -1     (same shape/dtype as x)
      scale_factor = sum(|x|) / sum(x.shape)     (sum of DIMS, matching torch code)
    """
    orig_shape = x.shape
    orig_dtype = x.dtype
    n_elems = math.prod(orig_shape)
    itemsize = jnp.dtype(orig_dtype).itemsize

    # Lane-dense 2D slab [rows, 128] in the native dtype.
    lane_pad = (-n_elems) % _LANES
    if lane_pad:
        # Rare fallback (numel not a multiple of 128): pad the last partial
        # lane row (costs an extra pass).  Aligned shapes (the common case)
        # take the free-reshape path below.
        flat = jnp.concatenate(
            [jnp.reshape(x, (n_elems,)), jnp.zeros((lane_pad,), orig_dtype)]
        )
    else:
        flat = jnp.reshape(x, (n_elems,))
    rows = (n_elems + lane_pad) // _LANES
    slab = jnp.reshape(flat, (rows, _LANES))

    # Block sizing by bytes: ~2 MiB per block buffer of the native dtype.
    target_rows = max(
        _ROW_ALIGN,
        (_TARGET_BLOCK_BYTES // (_LANES * itemsize)) // _ROW_ALIGN * _ROW_ALIGN,
    )
    block_rows = min(target_rows, _round_up(rows, _ROW_ALIGN))
    num_blocks = -(-rows // block_rows)
    ragged = (rows % block_rows) != 0

    kernel = functools.partial(
        _binarize_block_kernel, total_rows=rows if ragged else None
    )

    cost = pl.CostEstimate(
        flops=3 * n_elems,
        transcendentals=0,
        bytes_accessed=2 * n_elems * itemsize
        + num_blocks * _SUBLANES * _LANES * 4,
    )

    bin_out, partials = pl.pallas_call(
        kernel,
        out_shape=(
            jax.ShapeDtypeStruct((rows, _LANES), orig_dtype),
            jax.ShapeDtypeStruct((num_blocks * _SUBLANES, _LANES), jnp.float32),
        ),
        grid_spec=pltpu.PrefetchScalarGridSpec(
            num_scalar_prefetch=0,
            grid=(num_blocks,),
            in_specs=[pl.BlockSpec((block_rows, _LANES), lambda i: (i, 0))],
            out_specs=[
                pl.BlockSpec((block_rows, _LANES), lambda i: (i, 0)),
                pl.BlockSpec((_SUBLANES, _LANES), lambda i: (i, 0)),
            ],
        ),
        compiler_params=pltpu.CompilerParams(
            # No carried state -> grid axis is embarrassingly parallel.
            # TODO(synk): consider pltpu.CORE_PARALLEL on v7x so both
            # TensorCores' copy engines feed its 3.2 TB/s HBM.
            dimension_semantics=("parallel",),
        ),
        cost_estimate=cost,
    )(slab)

    if lane_pad:
        binarized = jnp.reshape(jnp.reshape(bin_out, (-1,))[:n_elems], orig_shape)
    else:
        binarized = jnp.reshape(bin_out, orig_shape)

    abs_sum = jnp.sum(partials)  # tiny (num_blocks*8, 128) reduce
    scale_factor = (abs_sum / jnp.float32(sum(orig_shape))).astype(orig_dtype)
    return binarized, scale_factor


if __name__ == "__main__":
    # Small NCHW image, f32 (single ragged block: 2048 elems -> 16 rows).
    key = jax.random.PRNGKey(0)
    x = jax.random.normal(key, (2, 4, 16, 16), dtype=jnp.float32)
    binarized, scale = binarize_with_scale_factor(x)
    jax.block_until_ready((binarized, scale))

    ref_bin = jnp.where(x >= 0, 1.0, -1.0).astype(x.dtype)
    ref_scale = jnp.sum(jnp.abs(x)) / sum(x.shape)
    assert binarized.shape == x.shape and binarized.dtype == x.dtype
    assert jnp.array_equal(binarized, ref_bin)
    assert jnp.allclose(scale, ref_scale, rtol=1e-5, atol=1e-5)

    # Native-bf16 path, exactly block-aligned (no mask, no padding anywhere).
    xb = jax.random.normal(
        jax.random.PRNGKey(1), (8, 16, 64, 64), dtype=jnp.bfloat16
    )
    bb, sb = binarize_with_scale_factor(xb)
    jax.block_until_ready((bb, sb))
    assert bb.shape == xb.shape and bb.dtype == xb.dtype
    assert jnp.array_equal(bb, jnp.where(xb >= 0, 1.0, -1.0).astype(xb.dtype))
    ref_sb = jnp.sum(jnp.abs(xb.astype(jnp.float32))) / sum(xb.shape)
    assert jnp.allclose(sb.astype(jnp.float32), ref_sb, rtol=2e-2)

    # Multi-block + ragged last block, f32 (6240 rows -> 2 blocks of 4096).
    x2 = jax.random.normal(
        jax.random.PRNGKey(2), (2, 3, 320, 416), dtype=jnp.float32
    )
    b2, s2 = binarize_with_scale_factor(x2)
    jax.block_until_ready((b2, s2))
    assert jnp.array_equal(b2, jnp.where(x2 >= 0, 1.0, -1.0).astype(x2.dtype))
    assert jnp.allclose(s2, jnp.sum(jnp.abs(x2)) / sum(x2.shape), rtol=1e-4)

    # Non-128-aligned numel fallback path (lane padding + output slice).
    x3 = jax.random.normal(jax.random.PRNGKey(3), (3, 5, 50, 30), dtype=jnp.float32)
    b3, s3 = binarize_with_scale_factor(x3)
    jax.block_until_ready((b3, s3))
    assert b3.shape == x3.shape and b3.dtype == x3.dtype
    assert jnp.array_equal(b3, jnp.where(x3 >= 0, 1.0, -1.0).astype(x3.dtype))
    assert jnp.allclose(s3, jnp.sum(jnp.abs(x3)) / sum(x3.shape), rtol=1e-5, atol=1e-5)

    print("KERNEL_OK")
</pallas_src>

<mosaic_0001>
module attributes {stable_mosaic.version = 11 : i64} {
  func.func @_binarize_block_kernel(%arg0: i32, %arg1: memref<32x128xf32, #tpu.memory_space<vmem>>, %arg2: memref<32x128xf32, #tpu.memory_space<vmem>>, %arg3: memref<8x128xf32, #tpu.memory_space<vmem>>) attributes {dimension_semantics = [#tpu.dimension_semantics<parallel>], iteration_bounds = array<i64: 1>, scalar_prefetch = 0 : i64, scratch_operands = 0 : i64, tpu.core_type = #tpu.core_type<tc>, window_params = [{transform_indices = @transform_0, window_bounds = array<i64: 32, 128>}, {transform_indices = @transform_1, window_bounds = array<i64: 32, 128>}, {transform_indices = @transform_2, window_bounds = array<i64: 8, 128>}]} {
    %c0 = arith.constant 0 : index
    %c0_0 = arith.constant 0 : index
    %0 = vector.load %arg1[%c0, %c0_0] : memref<32x128xf32, #tpu.memory_space<vmem>>, vector<32x128xf32>
    %cst = arith.constant 0.000000e+00 : f32
    %1 = vector.broadcast %cst : f32 to vector<32x128xf32>
    %2 = arith.cmpf oge, %0, %1 : vector<32x128xf32>
    %cst_1 = arith.constant 0.000000e+00 : f32
    %cst_2 = arith.constant 1.000000e+00 : f32
    %3 = arith.subf %cst_1, %cst_2 : f32
    %cst_3 = arith.constant 1.000000e+00 : f32
    %4 = vector.broadcast %cst_3 : f32 to vector<32x128xf32>
    %5 = vector.broadcast %3 : f32 to vector<32x128xf32>
    %6 = arith.select %2, %4, %5 : vector<32x128xi1>, vector<32x128xf32>
    %c0_4 = arith.constant 0 : index
    %c0_5 = arith.constant 0 : index
    %7 = vector.load %arg2[%c0_4, %c0_5] : memref<32x128xf32, #tpu.memory_space<vmem>>, vector<32x128xf32>
    tpu.vector_store %arg2[%c0_4, %c0_5], %6 {strides = array<i32>} : memref<32x128xf32, #tpu.memory_space<vmem>>, vector<32x128xf32>,
    %8 = math.absf %0 : vector<32x128xf32>
    %c32_i32 = arith.constant 32 : i32
    %9 = arith.muli %arg0, %c32_i32 : i32
    %10 = tpu.iota {dimensions = array<i32: 0>} : vector<32x128xi32>
    %11 = vector.broadcast %9 : i32 to vector<32x128xi32>
    %12 = arith.addi %11, %10 : vector<32x128xi32>
    %c16_i32 = arith.constant 16 : i32
    %13 = vector.broadcast %c16_i32 : i32 to vector<32x128xi32>
    %14 = arith.cmpi slt, %12, %13 : vector<32x128xi32>
    %cst_6 = arith.constant 0.000000e+00 : f32
    %15 = vector.broadcast %cst_6 : f32 to vector<32x128xf32>
    %16 = arith.select %14, %8, %15 : vector<32x128xi1>, vector<32x128xf32>
    %17 = vector.shape_cast %16 : vector<32x128xf32> to vector<4x8x128xf32>
    %cst_7 = arith.constant dense<0.000000e+00> : vector<8x128xf32>
    %18 = vector.multi_reduction <add>, %17, %cst_7 [0] : vector<4x8x128xf32> to vector<8x128xf32>
    %c0_8 = arith.constant 0 : index
    %c0_9 = arith.constant 0 : index
    %19 = vector.load %arg3[%c0_8, %c0_9] : memref<8x128xf32, #tpu.memory_space<vmem>>, vector<8x128xf32>
    tpu.vector_store %arg3[%c0_8, %c0_9], %18 {strides = array<i32>} : memref<8x128xf32, #tpu.memory_space<vmem>>, vector<8x128xf32>,
    return
  }
  func.func @transform_0(%arg0: i32) -> (i32, i32) {
    %c0_i32 = arith.constant 0 : i32
    %c0_i32_0 = arith.constant 0 : i32
    return %arg0, %c0_i32 : i32, i32
  }
  func.func @transform_1(%arg0: i32) -> (i32, i32) {
    %c0_i32 = arith.constant 0 : i32
    %c0_i32_0 = arith.constant 0 : i32
    return %arg0, %c0_i32 : i32, i32
  }
  func.func @transform_2(%arg0: i32) -> (i32, i32) {
    %c0_i32 = arith.constant 0 : i32
    %c0_i32_0 = arith.constant 0 : i32
    return %arg0, %c0_i32 : i32, i32
  }
}

</mosaic_0001>

<bundles_post_ra>
// kernel: binarize_with_scale_factor.1
= control target key start
LH: loop header
LB: loop body
LE: loop exit
PB: predicated region body
PF: predicated region fallthrough
CT: control target
= control target key end

     0   :  { %v103_v4 = vmov -1.0   ;;  %s134_s0 = inlined_call_operand.vmem [shape: f32[16,128], index: 0, kind: input, shape index: {}]   ;;  %s135_s1 = inlined_call_operand.vmem [shape: f32[16,128], index: 1, kind: output, shape index: {0}]   ;;  %s136_s2 = inlined_call_operand.vmem [shape: f32[8,128], index: 2, kind: output, shape index: {1}]  }
   0x1   :  { %v10_v0 = vld [vmem:[%s134_s0] sm:$0xff]  ;;  %v11_v1 = vld [vmem:[%s134_s0 + $0x8] sm:$0xff] }
   0x2   :  { %v26_v2 = vand.u32 2147483647, %v10_v0  ;;  %v27_v3 = vand.u32 2147483647, %v11_v1  ;;  %vm14_vm0 = vcmp.ge.f32.partialorder %v10_v0, 0.0  ;;  %vm15_vm1 = vcmp.ge.f32.partialorder %v11_v1, 0.0 }
   0x3   :  { %v18_v5 = vsel %vm14_vm0, 1.0, %v103_v4  ;;  %v19_v6 = vsel %vm15_vm1, 1.0, %v103_v4 }
   0x4   :  { %v49_v7 = vadd.f32 %v27_v3, %v26_v2  ;;  %86 = vst [vmem:[%s135_s1] sm:$0xff] %v18_v5 }
   0x5   :  { %88 = vst [vmem:[%s135_s1 + $0x8] sm:$0xff] %v19_v6 }
   0x6   :  { %52 = vst [vmem:[%s136_s2] sm:$0xff] %v49_v7 }

</bundles_post_ra>
